<compile_context>
chip_gen: v7x
topology: tpu7x:2x2x1
jax: 0.10.0
libtpu: 0.0.40
codegen_flags: <defaults>
</compile_context>

<pallas_src>
import jax
import jax.numpy as jnp
from jax.experimental import pallas as pl
from jax.experimental.pallas import tpu as pltpu

_EPS = 1e-6  # matches torch.nn.functional.pairwise_distance default eps


def _round_up(x, m):
    return (x + m - 1) // m * m


def _make_kernel(D, tile_d, nk, need_d_mask):
    """Build the pairwise-distance kernel specialized for the chosen tiling."""

    def kernel(x1_ref, x2_ref, o_ref):
        k = pl.program_id(1)  # feature-dim grid index (nk may be 1)

        x1 = x1_ref[...].astype(jnp.float32)
        x2 = x2_ref[...].astype(jnp.float32)
        diff = x1 - x2 + _EPS
        sq = diff * diff

        if need_d_mask:
            # Last D block overhangs the array: zero out invalid lanes.
            cols = jax.lax.broadcasted_iota(jnp.int32, sq.shape, 1)
            sq = jnp.where(cols < (D - k * tile_d), sq, 0.0)

        # Lane reduction -> (block_b,), presented lane-dense as (1, block_b)
        # (the sublane->lane relayout rides the XLU slot; free in this
        #  memory-bound regime, and makes the output store unmasked/dense).
        partial = jnp.sum(sq, axis=-1)[None, :]

        if nk == 1:
            o_ref[...] = jnp.sqrt(partial)
        else:
            @pl.when(k == 0)
            def _init():
                o_ref[...] = jnp.zeros_like(o_ref)

            o_ref[...] += partial

            @pl.when(k == nk - 1)
            def _finalize():
                o_ref[...] = jnp.sqrt(o_ref[...])

    return kernel


def criterion_forward(output1, output2, label=None, *, vmem_budget_bytes=20 << 20):
    """Pallas equivalent of Criterion.forward. Returns (B, 1) Euclidean distance."""
    del label  # unused in the torch forward as well
    assert output1.ndim == 2 and output1.shape == output2.shape
    B, D = output1.shape
    itemsize = jnp.dtype(output1.dtype).itemsize

    # Sublane packing: f32 -> 8 rows/vreg group, bf16 -> 16, int8/fp8 -> 32.
    sub_mult = 8 * max(1, 4 // itemsize)

    # Feature tiling: keep the whole row in one block when modest, otherwise
    # 128-aligned chunks accumulated across a second grid axis.
    max_full_d = 4096
    if D <= max_full_d:
        tile_d = D
    else:
        tile_d = 2048  # multiple of 128 -> unmasked vector loads
    nk = pl.cdiv(D, tile_d)
    need_d_mask = (tile_d != D) and (D % tile_d != 0)

    # Batch tiling: the largest tile that fits a conservative VMEM budget.
    # Rough per-row cost: 2 inputs x 2 pipeline buffers x tile_d x itemsize
    # plus ~3 f32 temporaries (diff/sq/upcasts) of tile_d each.
    bytes_per_row = tile_d * (4 * itemsize + 12)
    block_b = max(sub_mult, (vmem_budget_bytes // bytes_per_row) // sub_mult * sub_mult)
    block_b = min(block_b, _round_up(B, sub_mult), 8192)
    nb = pl.cdiv(B, block_b)

    kernel = _make_kernel(D, tile_d, nk, need_d_mask)

    out = pl.pallas_call(
        kernel,
        out_shape=jax.ShapeDtypeStruct((nb, block_b), jnp.float32),
        grid_spec=pltpu.PrefetchScalarGridSpec(
            num_scalar_prefetch=0,
            grid=(nb, nk),
            in_specs=[
                pl.BlockSpec((block_b, tile_d), lambda i, k: (i, k)),
                pl.BlockSpec((block_b, tile_d), lambda i, k: (i, k)),
            ],
            # Lane-dense output: one (1, block_b) row per batch tile, resident
            # across the (reduction) feature axis.
            out_specs=pl.BlockSpec((1, block_b), lambda i, k: (i, 0)),
        ),
        compiler_params=pltpu.CompilerParams(
            dimension_semantics=("parallel", "arbitrary"),
            vmem_limit_bytes=48 << 20,  # safe on v5e/v6e (128 MiB) and v7x (64 MiB)
        ),
        cost_estimate=pl.CostEstimate(
            flops=3 * B * D,
            transcendentals=B,
            bytes_accessed=2 * B * D * itemsize + 4 * B,
        ),
    )(output1, output2)

    # (nb, block_b) -> (B, 1); overhang rows (if B % block_b != 0) are dropped.
    dist = out.reshape(-1)[:B].reshape(B, 1)
    return dist.astype(output1.dtype)


if __name__ == "__main__":
    key = jax.random.PRNGKey(0)
    k1, k2, k3 = jax.random.split(key, 3)

    B, D = 16, 32  # small synthetic shapes: batch of embedding pairs
    output1 = jax.random.normal(k1, (B, D), dtype=jnp.float32)
    output2 = jax.random.normal(k2, (B, D), dtype=jnp.float32)
    label = (jax.random.uniform(k3, (B, 1)) > 0.5).astype(jnp.float32)

    dist = criterion_forward(output1, output2, label)
    dist = jax.block_until_ready(dist)

    # Reference check in plain JAX (same semantics as F.pairwise_distance).
    ref = jnp.sqrt(jnp.sum((output1 - output2 + _EPS) ** 2, axis=-1, keepdims=True))
    assert dist.shape == (B, 1)
    assert jnp.allclose(dist, ref, rtol=1e-5, atol=1e-5)

    print("KERNEL_OK")
</pallas_src>

<mosaic_0001>
module attributes {stable_mosaic.version = 11 : i64} {
  func.func @kernel(%arg0: i32, %arg1: i32, %arg2: memref<16x32xf32, #tpu.memory_space<vmem>>, %arg3: memref<16x32xf32, #tpu.memory_space<vmem>>, %arg4: memref<1x16xf32, #tpu.memory_space<vmem>>) attributes {dimension_semantics = [#tpu.dimension_semantics<parallel>, #tpu.dimension_semantics<arbitrary>], iteration_bounds = array<i64: 1, 1>, scalar_prefetch = 0 : i64, scratch_operands = 0 : i64, tpu.core_type = #tpu.core_type<tc>, window_params = [{transform_indices = @transform_0, window_bounds = array<i64: 16, 32>}, {transform_indices = @transform_1, window_bounds = array<i64: 16, 32>}, {transform_indices = @transform_2, window_bounds = array<i64: 1, 16>}]} {
    %c0 = arith.constant 0 : index
    %c0_0 = arith.constant 0 : index
    %0 = vector.load %arg2[%c0, %c0_0] : memref<16x32xf32, #tpu.memory_space<vmem>>, vector<16x32xf32>
    %c0_1 = arith.constant 0 : index
    %c0_2 = arith.constant 0 : index
    %1 = vector.load %arg3[%c0_1, %c0_2] : memref<16x32xf32, #tpu.memory_space<vmem>>, vector<16x32xf32>
    %2 = arith.subf %0, %1 : vector<16x32xf32>
    %cst = arith.constant 9.99999997E-7 : f32
    %3 = vector.broadcast %cst : f32 to vector<16x32xf32>
    %4 = arith.addf %2, %3 : vector<16x32xf32>
    %5 = arith.mulf %4, %4 : vector<16x32xf32>
    %cst_3 = arith.constant dense<0.000000e+00> : vector<16xf32>
    %6 = vector.multi_reduction <add>, %5, %cst_3 [1] : vector<16x32xf32> to vector<16xf32>
    %7 = vector.shape_cast %6 : vector<16xf32> to vector<1x16xf32>
    %8 = math.sqrt %7 : vector<1x16xf32>
    %c0_4 = arith.constant 0 : index
    %c0_5 = arith.constant 0 : index
    %9 = vector.load %arg4[%c0_4, %c0_5] : memref<1x16xf32, #tpu.memory_space<vmem>>, vector<1x16xf32>
    tpu.vector_store %arg4[%c0_4, %c0_5], %8 {strides = array<i32>} : memref<1x16xf32, #tpu.memory_space<vmem>>, vector<1x16xf32>,
    return
  }
  func.func @transform_0(%arg0: i32, %arg1: i32) -> (i32, i32) {
    %c0_i32 = arith.constant 0 : i32
    return %arg0, %arg1 : i32, i32
  }
  func.func @transform_1(%arg0: i32, %arg1: i32) -> (i32, i32) {
    %c0_i32 = arith.constant 0 : i32
    return %arg0, %arg1 : i32, i32
  }
  func.func @transform_2(%arg0: i32, %arg1: i32) -> (i32, i32) {
    %c0_i32 = arith.constant 0 : i32
    %c0_i32_0 = arith.constant 0 : i32
    return %arg0, %c0_i32 : i32, i32
  }
}

</mosaic_0001>

<bundles_post_ra>
// kernel: tpu_custom_call.1
= control target key start
LH: loop header
LB: loop body
LE: loop exit
PB: predicated region body
PF: predicated region fallthrough
CT: control target
= control target key end

     0   :  { %7 = vsyncpa [#allocation3], 0  ;;  %s242_s0 = inlined_call_operand.hbm [shape: f32[16,32], index: 0, kind: input, shape index: {}]   ;;  %s243_s1 = inlined_call_operand.hbm [shape: f32[16,32], index: 1, kind: input, shape index: {}]   ;;  %s244_s2 = inlined_call_operand.hbm [shape: f32[1,16], index: 2, kind: output, shape index: {}]  }
   0x1   :  { %8 = vsyncpa [#allocation6], 0 }
   0x2   :  { %9 = vsyncpa [#allocation4], 0  ;;  %s186_s9 = smov [#allocation2]   ;;  %s114_s13 = scalar_lea.hbm %s242_s0, 256 }
   0x3   :  { %s15_s10 = sshll.u32 %s186_s9, 4  ;;  %p115_p0 = scmp.ne.s32.totalorder %s242_s0, %s114_s13  ;;  %s16_s10 = int_to_ptr.vmem [resolvable:$true] %s15_s10 }
   0x4   :  { %p118_p1 = scmp.lt.u32.totalorder %s114_s13, %s242_s0 }
   0x6   :  { %p120_p2 = pnand %p118_p1, %p115_p0 }
   0x8   :  { %123 = shalt.err (!%p120_p2)
}
   0x9   :  { %s124_s18 = scalar_lea.vmem %s16_s10, 256  ;;  %p129_p4 = scmp.lt.s32.totalorder %s16_s10, %s16_s10 }
   0xa   :  { %p125_p3 = scmp.ne.s32.totalorder %s16_s10, %s124_s18  ;;  %p130_p5 = scmp.lt.s32.totalorder %s124_s18, %s124_s18 }
   0xc   :  { %p131_p6 = por %p130_p5, %p129_p4 }
   0xe   :  { %p132_p7 = pnand %p131_p6, %p125_p3 }
  0x10   :  { %135 = shalt.err (!%p132_p7)
}
  0x11   :  { %s187_s19 = smov 128   ;;  %s188_s20 = smov 8  }
  0x12   :  { %21 = dma.hbm_to_vmem [thread:$0]  %s242_s0, 256, %s16_s10, [#allocation3], %s187_s19, %s187_s19, %s188_s20  }
  0x13   :  { %s189_s23 = smov [#allocation5]   ;;  %s136_s27 = scalar_lea.hbm %s243_s1, 256 }
  0x14   :  { %s27_s24 = sshll.u32 %s189_s23, 4  ;;  %p137_p8 = scmp.ne.s32.totalorder %s243_s1, %s136_s27  ;;  %s28_s24 = int_to_ptr.vmem [resolvable:$true] %s27_s24 }
  0x15   :  { %p140_p9 = scmp.lt.u32.totalorder %s136_s27, %s243_s1 }
  0x17   :  { %p142_p10 = pnand %p140_p9, %p137_p8 }
  0x19   :  { %145 = shalt.err (!%p142_p10)
}
  0x1a   :  { %s146_s4 = scalar_lea.vmem %s28_s24, 256  ;;  %p151_p12 = scmp.lt.s32.totalorder %s28_s24, %s28_s24 }
  0x1b   :  { %p147_p11 = scmp.ne.s32.totalorder %s28_s24, %s146_s4  ;;  %p152_p13 = scmp.lt.s32.totalorder %s146_s4, %s146_s4 }
  0x1d   :  { %p153_p0 = por %p152_p13, %p151_p12 }
  0x1f   :  { %p154_p1 = pnand %p153_p0, %p147_p11 }
  0x21   :  { %157 = shalt.err (!%p154_p1)
}
  0x22   :  { %33 = dma.hbm_to_vmem [thread:$0]  %s243_s1, 256, %s28_s24, [#allocation6], %s187_s19, %s187_s19, %s188_s20  }
  0x23   :  { %180 = dma.done.wait [#allocation3], 256  }
  0x24   :  { %181 = vsyncadd [#allocation3], 4294967040 }
  0x25   :  { %182 = dma.done.wait [#allocation6], 256  }
  0x26   :  { %183 = vsyncadd [#allocation6], 4294967040  ;;  %v40_v0 = vld [vmem:[#allocation2] sm:$0xff]  ;;  %v42_v1 = vld [vmem:[#allocation5] sm:$0xff]  ;;  %vm50_vm0 = vcmask 261120   ;;  %v73_v14 = vlaneseq  ;;  %s190_s1 = smov [#allocation7]  }
  0x27   :  { %v41_v2 = vld [vmem:[#allocation2 + $0x8] sm:$0xff]  ;;  %v44_v3 = vsub.f32 %v40_v0, %v42_v1  ;;  %v43_v4 = vld [vmem:[#allocation5 + $0x8] sm:$0xff]  ;;  %s95_s6 = sshll.u32 %s190_s1, 4  ;;  %vm84_vm5 = vcmask 130112   ;;  %vm87_vm6 = vcmask 122880   ;;  %s96_s6 = int_to_ptr.vmem [resolvable:$true] %s95_s6 }
  0x28   :  { %v45_v5 = vsub.f32 %v41_v2, %v43_v4  ;;  %v74_v15 = vand.u32 127, %v73_v14  ;;  %v76_v18 = vshrl.u32 %v73_v14, 7  ;;  %s158_s7 = scalar_lea.vmem %s96_s6, 16  ;;  %s162_s8 = scalar_lea.vmem %s96_s6, 32 }
  0x29   :  { %v46_v6 = vadd.f32 1e-06, %v44_v3  ;;  %p159_p2 = scmp.ne.s32.totalorder %s96_s6, %s158_s7  ;;  %p163_p3 = scmp.lt.s32.totalorder %s96_s6, %s96_s6 }
  0x2a   :  { %v47_v7 = vadd.f32 1e-06, %v45_v5  ;;  %v79_v19 = vadd.s32 4294967288, %v74_v15  ;;  %v77_v24 = vsub.s32 %v74_v15, %v76_v18  ;;  %p164_p4 = scmp.lt.s32.totalorder %s162_s8, %s158_s7 }
  0x2b   :  { %v48_v8 = vmul.f32 %v46_v6, %v46_v6 }
  0x2c   :  { %v49_v9 = vmul.f32 %v47_v7, %v47_v7  ;;  %v82_v25 = vsub.s32 %v79_v19, %v76_v18  ;;  %p165_p5 = por %p164_p4, %p163_p3 }
  0x2d   :  { %v51_v10 = vsel %vm50_vm0, %v48_v8, 0.0 }
  0x2e   :  { %52 = vadd.xlane.f32.xlu0 %v51_v10  ;;  %v54_v11 = vsel %vm50_vm0, %v49_v9, 0.0  ;;  %p166_p6 = pnand %p165_p5, %p159_p2 }
  0x32   :  { %55 = vadd.xlane.f32.xlu0 %v54_v11 }
  0xbb   :  { %v53_v12 = vpop.xlane.xlu0 %52 }
  0xbc   :  { %110 = vrsqrt.f32 %v53_v12  ;;  %vm59_vm1 = vcmp.eq.f32.partialorder %v53_v12, inf  ;;  %v62_v22 = vand.u32 2147483648, %v53_v12  ;;  %vm61_vm2 = vcmp.eq.f32.partialorder %v53_v12, 0.0 }
  0xbf   :  { %v56_v13 = vpop.xlane.xlu0 %55 }
  0xc0   :  { %112 = vrsqrt.f32 %v56_v13  ;;  %vm66_vm3 = vcmp.eq.f32.partialorder %v56_v13, inf  ;;  %v69_v26 = vand.u32 2147483648, %v56_v13  ;;  %vm68_vm4 = vcmp.eq.f32.partialorder %v56_v13, 0.0 }
  0xc6   :  { %v111_v16 = vpop.eup %110 }
  0xc7   :  { %v58_v17 = vmul.f32 %v111_v16, %v53_v12 }
  0xc9   :  { %v60_v20 = vsel %vm59_vm1, %v53_v12, %v58_v17 }
  0xca   :  { %v113_v21 = vpop.eup %112  ;;  %v63_v27 = vsel %vm61_vm2, %v62_v22, %v60_v20 }
  0xcb   :  { %v65_v23 = vmul.f32 %v113_v21, %v56_v13  ;;  %v78_v30 = vrot.slane %v63_v27, %v77_v24 }
  0xcd   :  { %v67_v28 = vsel %vm66_vm3, %v56_v13, %v65_v23 }
  0xce   :  { %v70_v29 = vsel %vm68_vm4, %v69_v26, %v67_v28 }
  0xcf   :  { %v83_v31 = vrot.slane %v70_v29, %v82_v25 }
  0xd1   :  { %v85_v32 = vsel %vm84_vm5, %v83_v31, %v78_v30 }
  0xd2   :  { %88 = vst.msk [vmem:[#allocation7] sm:$0x1] %vm87_vm6, %v85_v32 }
  0xd3   :  { %169 = shalt.err (!%p166_p6)
}
  0xd4   :  { %s170_s11 = scalar_lea.hbm %s244_s2, 16 }
  0xd5   :  { %p171_p7 = scmp.ne.s32.totalorder %s244_s2, %s170_s11  ;;  %p174_p8 = scmp.lt.u32.totalorder %s170_s11, %s244_s2 }
  0xd7   :  { %p176_p9 = pnand %p174_p8, %p171_p7 }
  0xd9   :  { %179 = shalt.err (!%p176_p9)
}
  0xda   :  { %98 = dma.vmem_to_hbm [thread:$0]  %s96_s6, 16, %s244_s2, [#allocation4]  }
  0xdb   :  { %184 = dma.done.wait [#allocation4], 16  }
  0xdc   :  { %185 = vsyncadd [#allocation4], 4294967280 }
  0xdd   :  { %102 = vsyncpa [#allocation3], 1 }
  0xde   :  { %103 = vsyncpa [#allocation6], 1 }
  0xdf   :  { %104 = vsyncpa [#allocation4], 1 }

</bundles_post_ra>
